<compile_context>
chip_gen: v7x
topology: tpu7x:2x2x1
jax: 0.10.0
libtpu: 0.0.40
codegen_flags: <defaults>
</compile_context>

<pallas_src>
import jax
import jax.numpy as jnp
from jax.experimental import pallas as pl
from jax.experimental.pallas import tpu as pltpu


def _pad8(c: int) -> int:
    return ((c + 7) // 8) * 8


# -----------------------------------------------------------------------------
# Pallas kernel
# -----------------------------------------------------------------------------
def _make_encoder_kernel(channels, B: int, N: int):
    """channels = [2, h1, ..., feature_dim]; activations are (C, M), M = B*N.

    Ref order: x (2, M) f32, packed vecs (total, 2) f32,
               wT per layer ((Cout, Cin); layer 0 f32, rest bf16),
               out (B, F, N).
    """
    num_layers = len(channels) - 1
    M = B * N
    # Static, sublane-aligned offsets into the packed gamma/beta/bias table.
    offs, off = [], 0
    for c in channels[1:]:
        offs.append(off)
        off += _pad8(c)

    def kernel(x_ref, vec_ref, *refs):
        out_ref = refs[-1]
        w_refs = refs[:-1]
        eps = jnp.float32(1e-5)
        inv_m = jnp.float32(1.0 / M)

        x = x_ref[...]                                    # (2, M) f32
        h = None
        for li in range(num_layers):
            is_first = li == 0
            is_last = li == num_layers - 1
            cout = channels[li + 1]
            wT = w_refs[li][...]                          # (Cout, Cin)
            if is_first:
                # Cin == 2: two VPU broadcast-FMAs; MXU slot stays free.
                h = wT[:, 0:1] * x[0:1, :] + wT[:, 1:2] * x[1:2, :]
            else:
                # Conv1d(k=1) == channel matmul; bf16 operands, f32 accumulate.
                h = jnp.dot(wT, h, preferred_element_type=jnp.float32)

            o = offs[li]
            if is_last:
                b = vec_ref[o:o + cout, 0:1]              # final bias (F, 1)
                h = h + b
            else:
                g = vec_ref[o:o + cout, 0:1]              # gamma (Cout, 1)
                be = vec_ref[o:o + cout, 1:2]             # beta  (Cout, 1)
                # Hidden conv bias intentionally omitted: BN mean-subtraction
                # cancels it exactly (reference below keeps the bias).
                # Fused single-pass batch statistics over the M (lane) axis.
                s = jnp.sum(h, axis=1, keepdims=True)             # (Cout, 1)
                sq = jnp.sum(h * h, axis=1, keepdims=True)        # (Cout, 1)
                mu = s * inv_m
                var = jnp.maximum(sq * inv_m - mu * mu, 0.0)      # fp32 safety
                scale = jax.lax.rsqrt(var + eps) * g              # (Cout, 1)
                shift = be - mu * scale                           # folded affine
                # One FMA pass + ReLU fused with the bf16 downcast for the MXU.
                h = jnp.maximum(h * scale + shift, 0.0).astype(jnp.bfloat16)

        # Lane-dense NCW writeback: (F, M) -> (B, F, N) via static per-batch
        # column slices.  No XLA transpose after the kernel.
        for bi in range(B):
            out_ref[bi] = h[:, bi * N:(bi + 1) * N].astype(out_ref.dtype)

    return kernel


# -----------------------------------------------------------------------------
# Wrapper
# -----------------------------------------------------------------------------
def keypoint_encoder2d(kpts, params):
    """kpts: (B, N, 2) float32.
    params: per-layer tuples (w:(Cin,Cout), b:(1,Cout)[, gamma:(1,Cout), beta:(1,Cout)]).
    Returns (B, feature_dim, N), matching the PyTorch module output (NCW)."""
    B, N, two = kpts.shape
    assert two == 2, "keypoints must be 2-D coordinates"
    # Layout requirements: unmasked lane-dense stores need N % 128 == 0, and
    # channel widths must be sublane multiples to avoid masked sublane stores.
    assert N % 128 == 0, "N must be a multiple of 128 (lane-dense output stores)"
    for p in params:
        assert p[0].shape[1] % 8 == 0, "channel widths must be multiples of 8"

    M = B * N
    num_layers = len(params)
    channels = [2] + [p[0].shape[1] for p in params]
    feature_dim = channels[-1]

    # (B, N, 2) -> (2, M): tiny wrapper-side transpose (2*M floats).  The big
    # (B, F, N) output transpose is folded into the kernel instead.
    x_cf = kpts.reshape(M, 2).astype(jnp.float32).T               # (2, M)

    # Pack ALL tiny per-layer vectors (gamma/beta for hidden layers, bias for
    # the final layer) into one sublane-aligned (total, 2) table -> single DMA.
    total_pad = sum(_pad8(c) for c in channels[1:])
    vecs = jnp.zeros((total_pad, 2), jnp.float32)
    off = 0
    for li, p in enumerate(params):
        cout = channels[li + 1]
        if li == num_layers - 1:
            c0 = jnp.asarray(p[1], jnp.float32).reshape(-1)        # final bias
            c1 = jnp.zeros((cout,), jnp.float32)
        else:
            c0 = jnp.asarray(p[2], jnp.float32).reshape(-1)        # gamma
            c1 = jnp.asarray(p[3], jnp.float32).reshape(-1)        # beta
            # hidden conv bias p[1] NOT passed: cancelled by BN mean-subtraction
        vecs = vecs.at[off:off + cout, 0].set(c0)
        vecs = vecs.at[off:off + cout, 1].set(c1)
        off += _pad8(cout)

    # Weights transposed to (Cout, Cin).  First layer stays f32 (VPU outer
    # product); the MXU layers take bf16 operands with f32 accumulation.
    weights = []
    for li, p in enumerate(params):
        wT = jnp.asarray(p[0], jnp.float32).T
        weights.append(wT if li == 0 else wT.astype(jnp.bfloat16))

    kernel_inputs = [x_cf, vecs] + weights

    # --- VMEM budget: generation-aware, single-buffered single-slab design ---
    try:
        vmem_cap = int(pltpu.get_tpu_info().vmem_capacity_bytes)
    except Exception:
        vmem_cap = 64 << 20                     # conservative (v7x) fallback
    budget = int(0.75 * vmem_cap)               # ~48 MiB v7x, ~96 MiB v5e/v6e

    c_max = max(channels)
    param_bytes = sum(int(a.size) * a.dtype.itemsize for a in kernel_inputs)
    out_bytes = 4 * B * feature_dim * N
    act_bytes = 4 * M * c_max                   # largest fp32 activation slab
    # Buffered(1) everywhere -> single copies of inputs/output; allow ~3 live
    # activation-sized temporaries (h, h*h, normalized h) during a BN step.
    est_bytes = param_bytes + out_bytes + 3 * act_bytes
    # TODO(synk): M-tiled two-phase-BN fallback (grid over M with persistent
    # per-channel s/sq scratch, megacore split on v7x) instead of asserting.
    assert est_bytes <= budget, (
        f"single-block slab (~{est_bytes / 2**20:.1f} MiB) exceeds VMEM budget "
        f"({budget / 2**20:.1f} MiB); tile over M with a two-phase BN instead")

    kernel = _make_encoder_kernel(channels, B, N)

    # grid=(1,): nothing to pipeline, so disable double-buffering everywhere.
    single = pl.Buffered(buffer_count=1)
    in_specs = [
        pl.BlockSpec(a.shape, (lambda i, nd=a.ndim: (0,) * nd),
                     pipeline_mode=single)
        for a in kernel_inputs
    ]
    out_spec = pl.BlockSpec((B, feature_dim, N), lambda i: (0, 0, 0),
                            pipeline_mode=single)

    out = pl.pallas_call(
        kernel,
        out_shape=jax.ShapeDtypeStruct((B, feature_dim, N), jnp.float32),
        grid_spec=pltpu.PrefetchScalarGridSpec(
            num_scalar_prefetch=0,
            grid=(1,),
            in_specs=in_specs,
            out_specs=out_spec,
        ),
        compiler_params=pltpu.CompilerParams(
            dimension_semantics=("arbitrary",),
            vmem_limit_bytes=budget,
        ),
    )(*kernel_inputs)
    return out


# -----------------------------------------------------------------------------
# Deterministic parameter construction (mirrors MLP([2] + layers + [feature_dim]))
# -----------------------------------------------------------------------------
def make_params(feature_dim, layers, key):
    channels = [2] + list(layers) + [feature_dim]
    n = len(channels)
    params = []
    for i in range(1, n):
        cin, cout = channels[i - 1], channels[i]
        key, kw, kb, kg, kbe = jax.random.split(key, 5)
        scale = 1.0 / jnp.sqrt(jnp.float32(cin))
        w = jax.random.normal(kw, (cin, cout), jnp.float32) * scale
        if i == n - 1:
            # nn.init.constant_(encoder2d[-1].bias, 0.0)
            b = jnp.zeros((1, cout), jnp.float32)
            params.append((w, b))
        else:
            b = jax.random.normal(kb, (1, cout), jnp.float32) * 0.1
            gamma = 1.0 + 0.1 * jax.random.normal(kg, (1, cout), jnp.float32)
            beta = 0.1 * jax.random.normal(kbe, (1, cout), jnp.float32)
            params.append((w, b, gamma, beta))
    return params


# -----------------------------------------------------------------------------
# Pure-JAX f32 reference for validation (keeps hidden biases + two-pass variance)
# -----------------------------------------------------------------------------
def reference(kpts, params):
    B, N, _ = kpts.shape
    h = kpts.reshape(B * N, 2).astype(jnp.float32)
    eps = 1e-5
    for li, p in enumerate(params):
        is_last = li == len(params) - 1
        w, b = p[0], p[1]
        h = h @ w + b.reshape(1, -1)
        if not is_last:
            g, be = p[2], p[3]
            mu = jnp.mean(h, axis=0, keepdims=True)
            var = jnp.mean((h - mu) ** 2, axis=0, keepdims=True)
            h = (h - mu) / jnp.sqrt(var + eps) * g.reshape(1, -1) + be.reshape(1, -1)
            h = jnp.maximum(h, 0.0)
    F = params[-1][0].shape[1]
    return h.reshape(B, N, F).transpose(0, 2, 1)


if __name__ == "__main__":
    key = jax.random.PRNGKey(0)
    B, N = 2, 128            # N multiple of 128 -> lane-dense output stores
    feature_dim = 32
    layers = [32, 64]

    kpar, kx = jax.random.split(key)
    params = make_params(feature_dim, layers, kpar)
    kpts = jax.random.normal(kx, (B, N, 2), jnp.float32)

    out = keypoint_encoder2d(kpts, params)
    out = jax.block_until_ready(out)

    ref = reference(kpts, params)
    assert out.shape == (B, feature_dim, N), out.shape
    # bf16 MXU operands (f32 accumulation) -> loosened tolerance vs f32 ref.
    max_err = float(jnp.max(jnp.abs(out - ref)))
    assert jnp.allclose(out, ref, atol=5e-2, rtol=5e-2), max_err

    print("KERNEL_OK")
</pallas_src>

<mosaic_0001>
module attributes {stable_mosaic.version = 11 : i64} {
  func.func @kernel(%arg0: i32, %arg1: memref<2x256xf32, #tpu.memory_space<vmem>>, %arg2: memref<128x2xf32, #tpu.memory_space<vmem>>, %arg3: memref<32x2xf32, #tpu.memory_space<vmem>>, %arg4: memref<64x32xbf16, #tpu.memory_space<vmem>>, %arg5: memref<32x64xbf16, #tpu.memory_space<vmem>>, %arg6: memref<2x32x128xf32, #tpu.memory_space<vmem>>) attributes {dimension_semantics = [#tpu.dimension_semantics<arbitrary>], iteration_bounds = array<i64: 1>, scalar_prefetch = 0 : i64, scratch_operands = 0 : i64, tpu.core_type = #tpu.core_type<tc>, window_params = [{pipeline_mode = #tpu.pipeline_mode<synchronous>, transform_indices = @transform_0, window_bounds = array<i64: 2, 256>}, {pipeline_mode = #tpu.pipeline_mode<synchronous>, transform_indices = @transform_1, window_bounds = array<i64: 128, 2>}, {pipeline_mode = #tpu.pipeline_mode<synchronous>, transform_indices = @transform_2, window_bounds = array<i64: 32, 2>}, {pipeline_mode = #tpu.pipeline_mode<synchronous>, transform_indices = @transform_3, window_bounds = array<i64: 64, 32>}, {pipeline_mode = #tpu.pipeline_mode<synchronous>, transform_indices = @transform_4, window_bounds = array<i64: 32, 64>}, {pipeline_mode = #tpu.pipeline_mode<synchronous>, transform_indices = @transform_5, window_bounds = array<i64: 2, 32, 128>}]} {
    %c0 = arith.constant 0 : index
    %c0_0 = arith.constant 0 : index
    %0 = vector.load %arg1[%c0, %c0_0] : memref<2x256xf32, #tpu.memory_space<vmem>>, vector<2x256xf32>
    %c0_1 = arith.constant 0 : index
    %c0_2 = arith.constant 0 : index
    %1 = vector.load %arg3[%c0_1, %c0_2] : memref<32x2xf32, #tpu.memory_space<vmem>>, vector<32x2xf32>
    %2 = vector.extract_strided_slice %1 {offsets = [0, 0], sizes = [32, 1], strides = [1, 1]} : vector<32x2xf32> to vector<32x1xf32>
    %3 = vector.extract_strided_slice %0 {offsets = [0, 0], sizes = [1, 256], strides = [1, 1]} : vector<2x256xf32> to vector<1x256xf32>
    %4 = vector.broadcast %2 : vector<32x1xf32> to vector<32x256xf32>
    %5 = vector.broadcast %3 : vector<1x256xf32> to vector<32x256xf32>
    %6 = arith.mulf %4, %5 : vector<32x256xf32>
    %7 = vector.extract_strided_slice %1 {offsets = [0, 1], sizes = [32, 1], strides = [1, 1]} : vector<32x2xf32> to vector<32x1xf32>
    %8 = vector.extract_strided_slice %0 {offsets = [1, 0], sizes = [1, 256], strides = [1, 1]} : vector<2x256xf32> to vector<1x256xf32>
    %9 = vector.broadcast %7 : vector<32x1xf32> to vector<32x256xf32>
    %10 = vector.broadcast %8 : vector<1x256xf32> to vector<32x256xf32>
    %11 = arith.mulf %9, %10 : vector<32x256xf32>
    %12 = arith.addf %6, %11 : vector<32x256xf32>
    %c0_3 = arith.constant 0 : index
    %c0_4 = arith.constant 0 : index
    %13 = vector.load %arg2[%c0_3, %c0_4] : memref<128x2xf32, #tpu.memory_space<vmem>>, vector<32x1xf32>
    %c0_5 = arith.constant 0 : index
    %c1 = arith.constant 1 : index
    %14 = vector.load %arg2[%c0_5, %c1] : memref<128x2xf32, #tpu.memory_space<vmem>>, vector<32x1xf32>
    %cst = arith.constant dense<0.000000e+00> : vector<32xf32>
    %15 = vector.multi_reduction <add>, %12, %cst [1] : vector<32x256xf32> to vector<32xf32>
    %16 = vector.shape_cast %15 : vector<32xf32> to vector<32x1xf32>
    %17 = arith.mulf %12, %12 : vector<32x256xf32>
    %cst_6 = arith.constant dense<0.000000e+00> : vector<32xf32>
    %18 = vector.multi_reduction <add>, %17, %cst_6 [1] : vector<32x256xf32> to vector<32xf32>
    %19 = vector.shape_cast %18 : vector<32xf32> to vector<32x1xf32>
    %cst_7 = arith.constant 3.906250e-03 : f32
    %20 = vector.broadcast %cst_7 : f32 to vector<32x1xf32>
    %21 = arith.mulf %16, %20 : vector<32x1xf32>
    %cst_8 = arith.constant 3.906250e-03 : f32
    %22 = vector.broadcast %cst_8 : f32 to vector<32x1xf32>
    %23 = arith.mulf %19, %22 : vector<32x1xf32>
    %24 = arith.mulf %21, %21 : vector<32x1xf32>
    %25 = arith.subf %23, %24 : vector<32x1xf32>
    %cst_9 = arith.constant 0.000000e+00 : f32
    %26 = vector.broadcast %cst_9 : f32 to vector<32x1xf32>
    %27 = arith.maximumf %25, %26 : vector<32x1xf32>
    %cst_10 = arith.constant 9.99999974E-6 : f32
    %28 = vector.broadcast %cst_10 : f32 to vector<32x1xf32>
    %29 = arith.addf %27, %28 : vector<32x1xf32>
    %30 = math.rsqrt %29 : vector<32x1xf32>
    %31 = arith.mulf %30, %13 : vector<32x1xf32>
    %32 = arith.mulf %21, %31 : vector<32x1xf32>
    %33 = arith.subf %14, %32 : vector<32x1xf32>
    %34 = vector.broadcast %31 : vector<32x1xf32> to vector<32x256xf32>
    %35 = arith.mulf %12, %34 : vector<32x256xf32>
    %36 = vector.broadcast %33 : vector<32x1xf32> to vector<32x256xf32>
    %37 = arith.addf %35, %36 : vector<32x256xf32>
    %cst_11 = arith.constant 0.000000e+00 : f32
    %38 = vector.broadcast %cst_11 : f32 to vector<32x256xf32>
    %39 = arith.maximumf %37, %38 : vector<32x256xf32>
    %40 = arith.truncf %39 : vector<32x256xf32> to vector<32x256xbf16>
    %c0_12 = arith.constant 0 : index
    %c0_13 = arith.constant 0 : index
    %41 = vector.load %arg4[%c0_12, %c0_13] : memref<64x32xbf16, #tpu.memory_space<vmem>>, vector<64x32xbf16>
    %cst_14 = arith.constant dense<0.000000e+00> : vector<64x256xf32>
    %42 = tpu.matmul %41, %40, %cst_14 {dimension_numbers = #tpu.dot_dimension_numbers<[1], [0], [0], [1], [0, 0, 1, 1], [], []>} : vector<64x32xbf16>, vector<32x256xbf16>, vector<64x256xf32> -> vector<64x256xf32>
    %c32 = arith.constant 32 : index
    %c0_15 = arith.constant 0 : index
    %43 = vector.load %arg2[%c32, %c0_15] : memref<128x2xf32, #tpu.memory_space<vmem>>, vector<64x1xf32>
    %c32_16 = arith.constant 32 : index
    %c1_17 = arith.constant 1 : index
    %44 = vector.load %arg2[%c32_16, %c1_17] : memref<128x2xf32, #tpu.memory_space<vmem>>, vector<64x1xf32>
    %cst_18 = arith.constant dense<0.000000e+00> : vector<64xf32>
    %45 = vector.multi_reduction <add>, %42, %cst_18 [1] : vector<64x256xf32> to vector<64xf32>
    %46 = vector.shape_cast %45 : vector<64xf32> to vector<64x1xf32>
    %47 = arith.mulf %42, %42 : vector<64x256xf32>
    %cst_19 = arith.constant dense<0.000000e+00> : vector<64xf32>
    %48 = vector.multi_reduction <add>, %47, %cst_19 [1] : vector<64x256xf32> to vector<64xf32>
    %49 = vector.shape_cast %48 : vector<64xf32> to vector<64x1xf32>
    %cst_20 = arith.constant 3.906250e-03 : f32
    %50 = vector.broadcast %cst_20 : f32 to vector<64x1xf32>
    %51 = arith.mulf %46, %50 : vector<64x1xf32>
    %cst_21 = arith.constant 3.906250e-03 : f32
    %52 = vector.broadcast %cst_21 : f32 to vector<64x1xf32>
    %53 = arith.mulf %49, %52 : vector<64x1xf32>
    %54 = arith.mulf %51, %51 : vector<64x1xf32>
    %55 = arith.subf %53, %54 : vector<64x1xf32>
    %cst_22 = arith.constant 0.000000e+00 : f32
    %56 = vector.broadcast %cst_22 : f32 to vector<64x1xf32>
    %57 = arith.maximumf %55, %56 : vector<64x1xf32>
    %cst_23 = arith.constant 9.99999974E-6 : f32
    %58 = vector.broadcast %cst_23 : f32 to vector<64x1xf32>
    %59 = arith.addf %57, %58 : vector<64x1xf32>
    %60 = math.rsqrt %59 : vector<64x1xf32>
    %61 = arith.mulf %60, %43 : vector<64x1xf32>
    %62 = arith.mulf %51, %61 : vector<64x1xf32>
    %63 = arith.subf %44, %62 : vector<64x1xf32>
    %64 = vector.broadcast %61 : vector<64x1xf32> to vector<64x256xf32>
    %65 = arith.mulf %42, %64 : vector<64x256xf32>
    %66 = vector.broadcast %63 : vector<64x1xf32> to vector<64x256xf32>
    %67 = arith.addf %65, %66 : vector<64x256xf32>
    %cst_24 = arith.constant 0.000000e+00 : f32
    %68 = vector.broadcast %cst_24 : f32 to vector<64x256xf32>
    %69 = arith.maximumf %67, %68 : vector<64x256xf32>
    %70 = arith.truncf %69 : vector<64x256xf32> to vector<64x256xbf16>
    %c0_25 = arith.constant 0 : index
    %c0_26 = arith.constant 0 : index
    %71 = vector.load %arg5[%c0_25, %c0_26] : memref<32x64xbf16, #tpu.memory_space<vmem>>, vector<32x64xbf16>
    %cst_27 = arith.constant dense<0.000000e+00> : vector<32x256xf32>
    %72 = tpu.matmul %71, %70, %cst_27 {dimension_numbers = #tpu.dot_dimension_numbers<[1], [0], [0], [1], [0, 0, 1, 1], [], []>} : vector<32x64xbf16>, vector<64x256xbf16>, vector<32x256xf32> -> vector<32x256xf32>
    %c96 = arith.constant 96 : index
    %c0_28 = arith.constant 0 : index
    %73 = vector.load %arg2[%c96, %c0_28] : memref<128x2xf32, #tpu.memory_space<vmem>>, vector<32x1xf32>
    %74 = vector.broadcast %73 : vector<32x1xf32> to vector<32x256xf32>
    %75 = arith.addf %72, %74 : vector<32x256xf32>
    %76 = vector.extract_strided_slice %75 {offsets = [0, 0], sizes = [32, 128], strides = [1, 1]} : vector<32x256xf32> to vector<32x128xf32>
    %c0_29 = arith.constant 0 : index
    %c0_30 = arith.constant 0 : index
    %c0_31 = arith.constant 0 : index
    %77 = vector.load %arg6[%c0_29, %c0_30, %c0_31] : memref<2x32x128xf32, #tpu.memory_space<vmem>>, vector<1x32x128xf32>
    %78 = vector.shape_cast %77 : vector<1x32x128xf32> to vector<32x128xf32>
    %79 = vector.shape_cast %76 : vector<32x128xf32> to vector<1x32x128xf32>
    tpu.vector_store %arg6[%c0_29, %c0_30, %c0_31], %79 {strides = array<i32>} : memref<2x32x128xf32, #tpu.memory_space<vmem>>, vector<1x32x128xf32>,
    %80 = vector.extract_strided_slice %75 {offsets = [0, 128], sizes = [32, 128], strides = [1, 1]} : vector<32x256xf32> to vector<32x128xf32>
    %c1_32 = arith.constant 1 : index
    %c0_33 = arith.constant 0 : index
    %c0_34 = arith.constant 0 : index
    %81 = vector.load %arg6[%c1_32, %c0_33, %c0_34] : memref<2x32x128xf32, #tpu.memory_space<vmem>>, vector<1x32x128xf32>
    %82 = vector.shape_cast %81 : vector<1x32x128xf32> to vector<32x128xf32>
    %83 = vector.shape_cast %80 : vector<32x128xf32> to vector<1x32x128xf32>
    tpu.vector_store %arg6[%c1_32, %c0_33, %c0_34], %83 {strides = array<i32>} : memref<2x32x128xf32, #tpu.memory_space<vmem>>, vector<1x32x128xf32>,
    return
  }
  func.func @transform_0(%arg0: i32) -> (i32, i32) {
    %c0_i32 = arith.constant 0 : i32
    %c0_i32_0 = arith.constant 0 : i32
    %c0_i32_1 = arith.constant 0 : i32
    return %c0_i32, %c0_i32_0 : i32, i32
  }
  func.func @transform_1(%arg0: i32) -> (i32, i32) {
    %c0_i32 = arith.constant 0 : i32
    %c0_i32_0 = arith.constant 0 : i32
    %c0_i32_1 = arith.constant 0 : i32
    return %c0_i32, %c0_i32_0 : i32, i32
  }
  func.func @transform_2(%arg0: i32) -> (i32, i32) {
    %c0_i32 = arith.constant 0 : i32
    %c0_i32_0 = arith.constant 0 : i32
    %c0_i32_1 = arith.constant 0 : i32
    return %c0_i32, %c0_i32_0 : i32, i32
  }
  func.func @transform_3(%arg0: i32) -> (i32, i32) {
    %c0_i32 = arith.constant 0 : i32
    %c0_i32_0 = arith.constant 0 : i32
    %c0_i32_1 = arith.constant 0 : i32
    return %c0_i32, %c0_i32_0 : i32, i32
  }
  func.func @transform_4(%arg0: i32) -> (i32, i32) {
    %c0_i32 = arith.constant 0 : i32
    %c0_i32_0 = arith.constant 0 : i32
    %c0_i32_1 = arith.constant 0 : i32
    return %c0_i32, %c0_i32_0 : i32, i32
  }
  func.func @transform_5(%arg0: i32) -> (i32, i32, i32) {
    %c0_i32 = arith.constant 0 : i32
    %c0_i32_0 = arith.constant 0 : i32
    %c0_i32_1 = arith.constant 0 : i32
    %c0_i32_2 = arith.constant 0 : i32
    return %c0_i32, %c0_i32_0, %c0_i32_1 : i32, i32, i32
  }
}

</mosaic_0001>

<bundles_post_ra>
// kernel: tpu_custom_call.1
= control target key start
LH: loop header
LB: loop body
LE: loop exit
PB: predicated region body
PF: predicated region fallthrough
CT: control target
= control target key end

     0   :  { %v932_v1 = vmov 1   ;;  %v933_v2 = vmov 0   ;;  %s1274_s0 = inlined_call_operand.vmem [shape: f32[2,256], index: 0, kind: input, shape index: {}]   ;;  %s1275_s1 = inlined_call_operand.vmem [shape: f32[128,2], index: 1, kind: input, shape index: {}]   ;;  %s1276_s2 = inlined_call_operand.vmem [shape: f32[32,2], index: 2, kind: input, shape index: {}]   ;;  %s1277_s3 = inlined_call_operand.vmem [shape: bf16[64,32], index: 3, kind: input, shape index: {}]   ;;  %s1278_s4 = inlined_call_operand.vmem [shape: bf16[32,64], index: 4, kind: input, shape index: {}]   ;;  %s1279_s5 = inlined_call_operand.hbm [shape: f32[2,32,128], index: 5, kind: output, shape index: {}]  }
   0x1   :  { %v23_v0 = vld [vmem:[%s1276_s2] sm:$0xff]  ;;  %860 = vset.pattern.permute.xlu1 %v932_v1  ;;  %859 = vset.pattern.permute.xlu0 %v933_v2  ;;  %v24_v3 = vld [vmem:[%s1276_s2 + $0x8] sm:$0xff] }
   0x2   :  { %75 = vperm.xlu1 %860, %v23_v0   ;;  %29 = vperm.xlu0 %859, %v23_v0  }
   0x3   :  { %357 = vmatprep.mubr.bf16.mxu0 %v933_v2  ;;  %795 = vmatprep.mubr.bf16.mxu1 %v933_v2 }
   0x6   :  { %79 = vperm.xlu1 %860, %v24_v3   ;;  %34 = vperm.xlu0 %859, %v24_v3  }
   0x7   :  { %10 = vsyncpa [#allocation3], 0  ;;  %v25_v4 = vld [vmem:[%s1276_s2 + $0x10] sm:$0xff]  ;;  %v26_v5 = vld [vmem:[%s1276_s2 + $0x18] sm:$0xff]  ;;  %v48_v6 = vlaneseq  ;;  %s934_s9 = smov 1   ;;  %vm312_vm0 = vcmask 261120  }
   0x8   :  { %v22_v12 = vld [vmem:[%s1274_s0] sm:$0xf]  ;;  %vm756_vm1 = vcmask 523264   ;;  %s935_s17 = smov [#allocation2]  }
   0x9   :  { %v49_v7 = vshrl.u32 %v48_v6, 7 }
   0xa   :  { %861 = vset.pattern.permute.xlu1 %v933_v2  ;;  %39 = vperm.xlu0 %859, %v25_v4  }
   0xb   :  { %44 = vperm.xlu1 %861, %v26_v5   ;;  %v92_v8 = vsub.s32 1, %v49_v7  ;;  %v96_v9 = vsub.s32 3, %v49_v7  ;;  %v50_v10 = vsub.s32 0, %v49_v7  ;;  %v54_v11 = vsub.s32 2, %v49_v7 }
   0xd   :  { %v93_v13 = vrot.slane %v22_v12, %v92_v8  ;;  %v97_v14 = vrot.slane %v22_v12, %v96_v9  ;;  %v51_v15 = vrot.slane %v22_v12, %v50_v10  ;;  %v55_v16 = vrot.slane %v22_v12, %v54_v11 }
   0xe   :  { %862 = vset.pattern.permute.xlu0 %v932_v1 }
   0xf   :  { %863 = vset.pattern.permute.xlu1 %v932_v1  ;;  %83 = vperm.xlu0 %862, %v25_v4   ;;  %v103_v17 = vrot.slane %v93_v13, %v92_v8  ;;  %v107_v18 = vrot.slane %v97_v14, %v92_v8  ;;  %v61_v19 = vrot.slane %v51_v15, %v50_v10 }
  0x10   :  { %87 = vperm.xlu1 %863, %v26_v5   ;;  %v65_v20 = vrot.slane %v55_v16, %v50_v10 }
  0x13   :  { %865 = vset.pattern.permute.xlu0 %v933_v2 }
  0x14   :  { %864 = vset.pattern.permute.xlu1 %v933_v2 }
  0x81   :  { %v76_v21 = vpop.permute.xlu1 %75  ;;  %v30_v22 = vpop.permute.xlu0 %29 }
  0x82   :  { %v108_v23 = vmul.f32 %v103_v17, %v76_v21  ;;  %v109_v24 = vmul.f32 %v107_v18, %v76_v21  ;;  %v66_v25 = vmul.f32 %v61_v19, %v30_v22  ;;  %v67_v26 = vmul.f32 %v65_v20, %v30_v22 }
  0x84   :  { %v992_v27 = vadd.f32 %v108_v23, %v66_v25  ;;  %v994_v28 = vadd.f32 %v109_v24, %v67_v26 }
  0x85   :  { %v80_v29 = vpop.permute.xlu1 %79  ;;  %v35_v30 = vpop.permute.xlu0 %34 }
  0x86   :  { %v110_v31 = vmul.f32 %v103_v17, %v80_v29  ;;  %v111_v32 = vmul.f32 %v107_v18, %v80_v29  ;;  %v68_v33 = vmul.f32 %v61_v19, %v35_v30  ;;  %v69_v34 = vmul.f32 %v65_v20, %v35_v30 }
  0x87   :  { %v128_v35 = vadd.f32 %v994_v28, %v992_v27  ;;  %v140_v56 = vmul.f32 %v992_v27, %v992_v27  ;;  %v141_v57 = vmul.f32 %v994_v28, %v994_v28 }
  0x88   :  { %v998_v36 = vadd.f32 %v110_v31, %v68_v33  ;;  %v1000_v37 = vadd.f32 %v111_v32, %v69_v34 }
  0x89   :  { %129 = vadd.xlane.f32.xlu1 %v128_v35  ;;  %v40_v38 = vpop.permute.xlu0 %39  ;;  %v148_v61 = vadd.f32 %v141_v57, %v140_v56 }
  0x8a   :  { %v45_v39 = vpop.permute.xlu1 %44  ;;  %v131_v40 = vadd.f32 %v1000_v37, %v998_v36  ;;  %v70_v42 = vmul.f32 %v61_v19, %v40_v38  ;;  %v71_v43 = vmul.f32 %v65_v20, %v40_v38  ;;  %v142_v59 = vmul.f32 %v998_v36, %v998_v36 }
  0x8b   :  { %v72_v47 = vmul.f32 %v61_v19, %v45_v39  ;;  %v73_v48 = vmul.f32 %v65_v20, %v45_v39  ;;  %v143_v60 = vmul.f32 %v1000_v37, %v1000_v37 }
  0x8c   :  { %132 = vadd.xlane.f32.xlu0 %v131_v40 }
  0x8d   :  { %v151_v0 = vadd.f32 %v143_v60, %v142_v59 }
  0x8e   :  { %v84_v41 = vpop.permute.xlu0 %83 }
  0x8f   :  { %v112_v44 = vmul.f32 %v103_v17, %v84_v41  ;;  %v113_v45 = vmul.f32 %v107_v18, %v84_v41  ;;  %v88_v46 = vpop.permute.xlu1 %87 }
  0x90   :  { %v114_v49 = vmul.f32 %v103_v17, %v88_v46  ;;  %v115_v50 = vmul.f32 %v107_v18, %v88_v46 }
  0x91   :  { %v1004_v51 = vadd.f32 %v112_v44, %v70_v42  ;;  %v1006_v52 = vadd.f32 %v113_v45, %v71_v43  ;;  %v124_v43 = vld [vmem:[%s1275_s1] sm:$0xff]  ;;  %v125_v44 = vld [vmem:[%s1275_s1 + $0x8] sm:$0xff] }
  0x92   :  { %v1008_v53 = vadd.f32 %v114_v49, %v72_v47  ;;  %v1010_v54 = vadd.f32 %v115_v50, %v73_v48  ;;  %v126_v49 = vld [vmem:[%s1275_s1 + $0x10] sm:$0xff] }
  0x93   :  { %v134_v55 = vadd.f32 %v1006_v52, %v1004_v51  ;;  %v144_v62 = vmul.f32 %v1004_v51, %v1004_v51  ;;  %v145_v63 = vmul.f32 %v1006_v52, %v1006_v52 }
  0x94   :  { %v137_v58 = vadd.f32 %v1010_v54, %v1008_v53  ;;  %v146_v3 = vmul.f32 %v1008_v53, %v1008_v53  ;;  %v147_v4 = vmul.f32 %v1010_v54, %v1010_v54 }
  0x95   :  { %135 = vadd.xlane.f32.xlu0 %v134_v55  ;;  %v154_v5 = vadd.f32 %v145_v63, %v144_v62  ;;  %v127_v55 = vld [vmem:[%s1275_s1 + $0x18] sm:$0xff] }
  0x96   :  { %138 = vadd.xlane.f32.xlu1 %v137_v58  ;;  %v157_v6 = vadd.f32 %v147_v4, %v146_v3 }
  0x99   :  { %149 = vadd.xlane.f32.xlu0 %v148_v61 }
  0x9a   :  { %152 = vadd.xlane.f32.xlu1 %v151_v0 }
  0x9d   :  { %155 = vadd.xlane.f32.xlu0 %v154_v5 }
  0x9e   :  { %158 = vadd.xlane.f32.xlu1 %v157_v6 }
 0x116   :  { %v130_v8 = vpop.xlane.xlu1 %129 }
 0x117   :  { %v160_v10 = vmul.f32 0.00390625, %v130_v8 }
 0x119   :  { %v133_v7 = vpop.xlane.xlu0 %132  ;;  %v168_v14 = vmul.f32 %v160_v10, %v160_v10 }
 0x11a   :  { %v161_v12 = vmul.f32 0.00390625, %v133_v7 }
 0x11c   :  { %v169_v18 = vmul.f32 %v161_v12, %v161_v12 }
 0x122   :  { %v136_v9 = vpop.xlane.xlu0 %135 }
 0x123   :  { %v139_v11 = vpop.xlane.xlu1 %138  ;;  %v162_v15 = vmul.f32 0.00390625, %v136_v9 }
 0x124   :  { %v163_v19 = vmul.f32 0.00390625, %v139_v11 }
 0x125   :  { %v170_v24 = vmul.f32 %v162_v15, %v162_v15 }
 0x126   :  { %v150_v13 = vpop.xlane.xlu0 %149  ;;  %v171_v30 = vmul.f32 %v163_v19, %v163_v19 }
 0x127   :  { %v164_v16 = vmul.f32 0.00390625, %v150_v13  ;;  %v153_v17 = vpop.xlane.xlu1 %152 }
 0x128   :  { %v165_v20 = vmul.f32 0.00390625, %v153_v17 }
 0x129   :  { %v172_v21 = vsub.f32 %v164_v16, %v168_v14 }
 0x12a   :  { %v173_v22 = vsub.f32 %v165_v20, %v169_v18  ;;  %v156_v23 = vpop.xlane.xlu0 %155 }
 0x12b   :  { %v176_v25 = vmax.f32 %v172_v21, 0.0  ;;  %v166_v26 = vmul.f32 0.00390625, %v156_v23  ;;  %v159_v29 = vpop.xlane.xlu1 %158 }
 0x12c   :  { %v177_v31 = vmax.f32 %v173_v22, 0.0  ;;  %v167_v32 = vmul.f32 0.00390625, %v159_v29 }
 0x12d   :  { %v180_v33 = vadd.f32 1e-05, %v176_v25  ;;  %v174_v34 = vsub.f32 %v166_v26, %v170_v24 }
 0x12e   :  { %v181_v35 = vadd.f32 1e-05, %v177_v31  ;;  %v175_v38 = vsub.f32 %v167_v32, %v171_v30 }
 0x12f   :  { %884 = vrsqrt.f32 %v180_v33  ;;  %v178_v39 = vmax.f32 %v174_v34, 0.0 }
 0x130   :  { %886 = vrsqrt.f32 %v181_v35  ;;  %v179_v40 = vmax.f32 %v175_v38, 0.0 }
 0x131   :  { %v182_v41 = vadd.f32 1e-05, %v178_v39 }
 0x132   :  { %v183_v42 = vadd.f32 1e-05, %v179_v40 }
 0x133   :  { %888 = vrsqrt.f32 %v182_v41 }
 0x134   :  { %890 = vrsqrt.f32 %v183_v42  ;;  %v879_v42 = vld [vmem:[%s1277_s3 + $0x8] sm:$0xff]  }
 0x139   :  { %v885_v45 = vpop.eup %884 }
 0x13a   :  { %v887_v46 = vpop.eup %886  ;;  %v188_v47 = vmul.f32 %v885_v45, %v124_v43 }
 0x13b   :  { %v189_v48 = vmul.f32 %v887_v46, %v125_v44 }
 0x13c   :  { %v192_v50 = vmul.f32 %v188_v47, %v160_v10 }
 0x13d   :  { %v889_v56 = vpop.eup %888  ;;  %v193_v57 = vmul.f32 %v189_v48, %v161_v12 }
 0x13e   :  { %v891_v58 = vpop.eup %890  ;;  %200 = vrot.lane.b32.xlu0 %v192_v50, %s934_s9  ;;  %v190_v59 = vmul.f32 %v889_v56, %v126_v49 }
 0x13f   :  { %202 = vrot.lane.b32.xlu1 %v193_v57, %s934_s9  ;;  %v191_v60 = vmul.f32 %v891_v58, %v127_v55 }
 0x140   :  { %v194_v61 = vmul.f32 %v190_v59, %v162_v15 }
 0x141   :  { %v195_v62 = vmul.f32 %v191_v60, %v163_v19 }
 0x143   :  { %204 = vrot.lane.b32.xlu1 %v194_v61, %s934_s9  ;;  %206 = vrot.lane.b32.xlu0 %v195_v62, %s934_s9 }
 0x147   :  { %218 = vperm.xlu1 %864, %v188_v47   ;;  %223 = vperm.xlu0 %865, %v189_v48  }
 0x14b   :  { %233 = vperm.xlu1 %864, %v191_v60   ;;  %228 = vperm.xlu0 %865, %v190_v59  }
 0x14f   :  { %866 = vset.pattern.permute.xlu1 %v932_v1  ;;  %867 = vset.pattern.permute.xlu0 %v932_v1 }
 0x1b0   :  { %v201_v63 = vpop.permute.xlu0 %200 }
 0x1b1   :  { %v212_v0 = vsub.f32 %v124_v43, %v201_v63  ;;  %v203_v3 = vpop.permute.xlu1 %202  ;;  %v880_v43 = vld [vmem:[%s1277_s3 + $0x10] sm:$0xff]  }
 0x1b2   :  { %v213_v4 = vsub.f32 %v125_v44, %v203_v3  ;;  %v881_v44 = vld [vmem:[%s1277_s3 + $0x18] sm:$0xff]  }
 0x1b3   :  { %246 = vperm.xlu1 %866, %v212_v0  }
 0x1b5   :  { %v205_v5 = vpop.permute.xlu1 %204  ;;  %v207_v6 = vpop.permute.xlu0 %206 }
 0x1b6   :  { %v214_v7 = vsub.f32 %v126_v49, %v205_v5  ;;  %v215_v8 = vsub.f32 %v127_v55, %v207_v6 }
 0x1b7   :  { %251 = vperm.xlu1 %866, %v213_v4  }
 0x1b8   :  { %256 = vperm.xlu0 %867, %v214_v7  }
 0x1bb   :  { %261 = vperm.xlu1 %866, %v215_v8  }
 0x1bc   :  { %869 = vset.pattern.permute.xlu0 %v933_v2 }
 0x1bf   :  { %868 = vset.pattern.permute.xlu1 %v933_v2 }
 0x1c6   :  { %v219_v9 = vpop.permute.xlu1 %218  ;;  %v224_v10 = vpop.permute.xlu0 %223 }
 0x1c7   :  { %v236_v12 = vmul.f32 %v219_v9, %v992_v27  ;;  %v237_v13 = vmul.f32 %v219_v9, %v994_v28  ;;  %v238_v18 = vmul.f32 %v224_v10, %v998_v36  ;;  %v239_v19 = vmul.f32 %v224_v10, %v1000_v37 }
 0x1ca   :  { %v234_v11 = vpop.permute.xlu1 %233  ;;  %v229_v15 = vpop.permute.xlu0 %228 }
 0x1cb   :  { %v240_v21 = vmul.f32 %v229_v15, %v1004_v51  ;;  %v241_v22 = vmul.f32 %v229_v15, %v1006_v52  ;;  %v242_v27 = vmul.f32 %v234_v11, %v1008_v53  ;;  %v243_v28 = vmul.f32 %v234_v11, %v1010_v54  ;;  %v878_v54 = vld [vmem:[%s1277_s3] sm:$0xff]   ;;  %s830_s3 = sshll.u32 %s935_s17, 4  ;;  %s831_s3 = int_to_ptr.vmem [resolvable:$true] %s830_s3 }
 0x1cc   :  { %p913_p1 = scmp.lt.s32.totalorder %s831_s3, %s831_s3 }
 0x232   :  { %v247_v14 = vpop.permute.xlu1 %246 }
 0x233   :  { %v264_v16 = vadd.f32 %v247_v14, %v236_v12  ;;  %v265_v17 = vadd.f32 %v247_v14, %v237_v13 }
 0x235   :  { %v272_v26 = vmax.f32 %v264_v16, 0.0  ;;  %v273_v29 = vmax.f32 %v265_v17, 0.0 }
 0x236   :  { %v252_v20 = vpop.permute.xlu1 %251 }
 0x237   :  { %v266_v23 = vadd.f32 %v252_v20, %v238_v18  ;;  %v267_v24 = vadd.f32 %v252_v20, %v239_v19  ;;  %v257_v25 = vpop.permute.xlu0 %256 }
 0x238   :  { %v268_v31 = vadd.f32 %v257_v25, %v240_v21  ;;  %v269_v32 = vadd.f32 %v257_v25, %v241_v22 }
 0x239   :  { %v274_v30 = vmax.f32 %v266_v23, 0.0  ;;  %v275_v36 = vmax.f32 %v267_v24, 0.0 }
 0x23a   :  { %v262_v33 = vpop.permute.xlu1 %261  ;;  %v276_v38 = vmax.f32 %v268_v31, 0.0  ;;  %v277_v52 = vmax.f32 %v269_v32, 0.0 }
 0x23b   :  { %v270_v37 = vadd.f32 %v262_v33, %v242_v27  ;;  %v271_v34 = vadd.f32 %v262_v33, %v243_v28  ;;  %v281_v35 = vpack.c.bf16 %v275_v36, %v273_v29  ;;  %v280_v51 = vpack.c.bf16 %v274_v30, %v272_v26 }
 0x23d   :  { %v278_v39 = vmax.f32 %v270_v37, 0.0  ;;  %v279_v40 = vmax.f32 %v271_v34, 0.0  ;;  %325 = vmatprep.subr.bf16.mxu0 %v281_v35 }
 0x23e   :  { %326 = vmatpush1.bf16.msra.mxu0 %v280_v51 }
 0x23f   :  { %v283_v53 = vpack.c.bf16 %v279_v40, %v277_v52  ;;  %v282_v41 = vpack.c.bf16 %v278_v39, %v276_v38 }
 0x241   :  { %327 = vmatprep.subr.bf16.mxu0 %v283_v53 }
 0x242   :  { %328 = vmatpush1.bf16.msra.mxu0 %v282_v41 }
 0x245   :  { %845 = vmatmul.mubr.msk.bf16.vlgmr.msra.gmra.mrb[0].mxu0 %vm312_vm0, %v878_v54 }
 0x246   :  { %367 = vmatprep.mubr.bf16.mxu0 %v933_v2 }
 0x24d   :  { %846 = vmatmul.mubr.msk.bf16.gmra.mrb[4].mxu0 %vm312_vm0, %v879_v42 }
 0x24e   :  { %377 = vmatprep.mubr.bf16.mxu0 %v933_v2 }
 0x255   :  { %847 = vmatmul.mubr.msk.bf16.gmra.mrb[8].mxu0 %vm312_vm0, %v880_v43 }
 0x256   :  { %387 = vmatprep.mubr.bf16.mxu0 %v933_v2 }
 0x25d   :  { %848 = vmatmul.mubr.msk.bf16.gmra.mrb[12].mxu0 %vm312_vm0, %v881_v44 }
 0x318   :  { %v1075_v45 = vpop.f32.mrb[0].mxu0 }
 0x319   :  { %v1077_v46 = vpop.f32.mrb[1].mxu0  ;;  %v430_v47 = vmul.f32 %v1075_v45, %v1075_v45 }
 0x31a   :  { %v1081_v48 = vpop.f32.mrb[2].mxu0  ;;  %v406_v49 = vadd.f32 %v1077_v46, %v1075_v45  ;;  %v431_v50 = vmul.f32 %v1077_v46, %v1077_v46 }
 0x31b   :  { %v1087_v55 = vpop.f32.mrb[3].mxu0  ;;  %v432_v56 = vmul.f32 %v1081_v48, %v1081_v48 }
 0x31c   :  { %407 = vadd.xlane.f32.xlu1 %v406_v49  ;;  %v409_v57 = vadd.f32 %v1087_v55, %v1081_v48  ;;  %v433_v58 = vmul.f32 %v1087_v55, %v1087_v55  ;;  %v446_v59 = vadd.f32 %v431_v50, %v430_v47 }
 0x31e   :  { %410 = vadd.xlane.f32.xlu0 %v409_v57  ;;  %v449_v60 = vadd.f32 %v433_v58, %v432_v56 }
 0x320   :  { %450 = vadd.xlane.f32.xlu1 %v449_v60  ;;  %v1095_v61 = vpop.f32.mrb[4].mxu0 }
 0x321   :  { %v1097_v62 = vpop.f32.mrb[5].mxu0  ;;  %v434_v63 = vmul.f32 %v1095_v61, %v1095_v61 }
 0x322   :  { %447 = vadd.xlane.f32.xlu0 %v446_v59  ;;  %v1101_v0 = vpop.f32.mrb[6].mxu0  ;;  %v412_v3 = vadd.f32 %v1097_v62, %v1095_v61  ;;  %v435_v4 = vmul.f32 %v1097_v62, %v1097_v62 }
 0x323   :  { %v1107_v5 = vpop.f32.mrb[7].mxu0  ;;  %v436_v6 = vmul.f32 %v1101_v0, %v1101_v0 }
 0x324   :  { %v415_v7 = vadd.f32 %v1107_v5, %v1101_v0  ;;  %v452_v8 = vadd.f32 %v435_v4, %v434_v63  ;;  %v437_v9 = vmul.f32 %v1107_v5, %v1107_v5 }
 0x326   :  { %413 = vadd.xlane.f32.xlu0 %v412_v3  ;;  %416 = vadd.xlane.f32.xlu1 %v415_v7  ;;  %v455_v10 = vadd.f32 %v437_v9, %v436_v6 }
 0x328   :  { %v1115_v11 = vpop.f32.mrb[8].mxu0 }
 0x329   :  { %v1117_v12 = vpop.f32.mrb[9].mxu0  ;;  %v438_v13 = vmul.f32 %v1115_v11, %v1115_v11 }
 0x32a   :  { %453 = vadd.xlane.f32.xlu0 %v452_v8  ;;  %456 = vadd.xlane.f32.xlu1 %v455_v10  ;;  %v1121_v14 = vpop.f32.mrb[10].mxu0  ;;  %v418_v15 = vadd.f32 %v1117_v12, %v1115_v11  ;;  %v439_v16 = vmul.f32 %v1117_v12, %v1117_v12 }
 0x32b   :  { %v1127_v17 = vpop.f32.mrb[11].mxu0  ;;  %v440_v18 = vmul.f32 %v1121_v14, %v1121_v14 }
 0x32c   :  { %v421_v19 = vadd.f32 %v1127_v17, %v1121_v14  ;;  %v458_v20 = vadd.f32 %v439_v16, %v438_v13  ;;  %v441_v21 = vmul.f32 %v1127_v17, %v1127_v17 }
 0x32e   :  { %419 = vadd.xlane.f32.xlu0 %v418_v15  ;;  %422 = vadd.xlane.f32.xlu1 %v421_v19  ;;  %v461_v22 = vadd.f32 %v441_v21, %v440_v18  ;;  %v1170_v21 = vld [vmem:[%s1275_s1 + $0x28] sm:$0xff] }
 0x330   :  { %v1135_v23 = vpop.f32.mrb[12].mxu0 }
 0x331   :  { %v1137_v24 = vpop.f32.mrb[13].mxu0  ;;  %v442_v25 = vmul.f32 %v1135_v23, %v1135_v23 }
 0x332   :  { %459 = vadd.xlane.f32.xlu0 %v458_v20  ;;  %462 = vadd.xlane.f32.xlu1 %v461_v22  ;;  %v1141_v27 = vpop.f32.mrb[14].mxu0  ;;  %v424_v28 = vadd.f32 %v1137_v24, %v1135_v23  ;;  %v443_v26 = vmul.f32 %v1137_v24, %v1137_v24 }
 0x333   :  { %v1147_v29 = vpop.f32.mrb[15].mxu0  ;;  %v444_v30 = vmul.f32 %v1141_v27, %v1141_v27 }
 0x334   :  { %v445_v31 = vmul.f32 %v1147_v29, %v1147_v29  ;;  %v427_v32 = vadd.f32 %v1147_v29, %v1141_v27  ;;  %v464_v36 = vadd.f32 %v443_v26, %v442_v25 }
 0x336   :  { %425 = vadd.xlane.f32.xlu0 %v424_v28  ;;  %428 = vadd.xlane.f32.xlu1 %v427_v32  ;;  %v467_v33 = vadd.f32 %v445_v31, %v444_v30 }
 0x33a   :  { %465 = vadd.xlane.f32.xlu0 %v464_v36  ;;  %468 = vadd.xlane.f32.xlu1 %v467_v33  ;;  %v1179_v36 = vld [vmem:[%s1275_s1 + $0x20] sm:$0xff] }
 0x3a9   :  { %v408_v37 = vpop.xlane.xlu1 %407 }
 0x3aa   :  { %v470_v35 = vmul.f32 0.00390625, %v408_v37 }
 0x3ab   :  { %v411_v34 = vpop.xlane.xlu0 %410 }
 0x3ac   :  { %v471_v51 = vmul.f32 0.00390625, %v411_v34  ;;  %v486_v53 = vmul.f32 %v470_v35, %v470_v35 }
 0x3ad   :  { %v451_v38 = vpop.xlane.xlu1 %450 }
 0x3ae   :  { %v487_v52 = vmul.f32 %v471_v51, %v471_v51  ;;  %v479_v39 = vmul.f32 0.00390625, %v451_v38 }
 0x3af   :  { %v448_v40 = vpop.xlane.xlu0 %447 }
 0x3b0   :  { %v495_v41 = vsub.f32 %v479_v39, %v487_v52  ;;  %v478_v54 = vmul.f32 0.00390625, %v448_v40 }
 0x3b2   :  { %v503_v42 = vmax.f32 %v495_v41, 0.0  ;;  %v494_v43 = vsub.f32 %v478_v54, %v486_v53 }
 0x3b3   :  { %v414_v44 = vpop.xlane.xlu0 %413  ;;  %v417_v47 = vpop.xlane.xlu1 %416 }
 0x3b4   :  { %v511_v49 = vadd.f32 1e-05, %v503_v42  ;;  %v502_v50 = vmax.f32 %v494_v43, 0.0  ;;  %v1155_v56 = vmul.f32 0.00390625, %v414_v44  ;;  %v1157_v57 = vmul.f32 0.00390625, %v417_v47 }
 0x3b6   :  { %892 = vrsqrt.f32 %v511_v49  ;;  %v510_v58 = vadd.f32 1e-05, %v502_v50  ;;  %v488_v59 = vmul.f32 %v1155_v56, %v1155_v56  ;;  %v489_v3 = vmul.f32 %v1157_v57, %v1157_v57 }
 0x3b7   :  { %v454_v60 = vpop.xlane.xlu0 %453  ;;  %v457_v63 = vpop.xlane.xlu1 %456 }
 0x3b8   :  { %894 = vrsqrt.f32 %v510_v58  ;;  %v480_v4 = vmul.f32 0.00390625, %v454_v60  ;;  %v481_v6 = vmul.f32 0.00390625, %v457_v63 }
 0x3ba   :  { %v496_v7 = vsub.f32 %v480_v4, %v488_v59  ;;  %v497_v8 = vsub.f32 %v481_v6, %v489_v3  ;;  %v400_v3 = vld [vmem:[%s1275_s1 + $0x30] sm:$0xff] }
 0x3bb   :  { %v420_v9 = vpop.xlane.xlu0 %419  ;;  %v423_v10 = vpop.xlane.xlu1 %422 }
 0x3bc   :  { %v504_v13 = vmax.f32 %v496_v7, 0.0  ;;  %v505_v15 = vmax.f32 %v497_v8, 0.0  ;;  %v1163_v16 = vmul.f32 0.00390625, %v420_v9  ;;  %v1165_v18 = vmul.f32 0.00390625, %v423_v10 }
 0x3be   :  { %v512_v19 = vadd.f32 1e-05, %v504_v13  ;;  %v513_v20 = vadd.f32 1e-05, %v505_v15  ;;  %v490_v22 = vmul.f32 %v1163_v16, %v1163_v16  ;;  %v491_v30 = vmul.f32 %v1165_v18, %v1165_v18 }
 0x3bf   :  { %v460_v25 = vpop.xlane.xlu0 %459  ;;  %v463_v28 = vpop.xlane.xlu1 %462 }
 0x3c0   :  { %v893_v26 = vpop.eup %892  ;;  %896 = vrsqrt.f32 %v512_v19  ;;  %v482_v31 = vmul.f32 0.00390625, %v460_v25  ;;  %v483_v32 = vmul.f32 0.00390625, %v463_v28  ;;  %v402_v28 = vld [vmem:[%s1275_s1 + $0x40] sm:$0xff] }
 0x3c1   :  { %898 = vrsqrt.f32 %v513_v20  ;;  %v1182_v33 = vmul.f32 %v893_v26, %v1170_v21  ;;  %v403_v26 = vld [vmem:[%s1275_s1 + $0x48] sm:$0xff] }
 0x3c2   :  { %v895_v37 = vpop.eup %894  ;;  %v498_v34 = vsub.f32 %v482_v31, %v490_v22  ;;  %v499_v38 = vsub.f32 %v483_v32, %v491_v30 }
 0x3c3   :  { %v426_v52 = vpop.xlane.xlu0 %425  ;;  %v429_v39 = vpop.xlane.xlu1 %428  ;;  %v535_v40 = vmul.f32 %v1182_v33, %v471_v51  ;;  %v526_v53 = vmul.f32 %v895_v37, %v1179_v36 }
 0x3c4   :  { %v506_v41 = vmax.f32 %v498_v34, 0.0  ;;  %v507_v54 = vmax.f32 %v499_v38, 0.0  ;;  %v476_v42 = vmul.f32 0.00390625, %v426_v52  ;;  %v477_v43 = vmul.f32 0.00390625, %v429_v39  ;;  %v404_v34 = vld [vmem:[%s1275_s1 + $0x50] sm:$0xff]  ;;  %v405_v38 = vld [vmem:[%s1275_s1 + $0x58] sm:$0xff] }
 0x3c5   :  { %552 = vrot.lane.b32.xlu1 %v535_v40, %s934_s9  ;;  %v534_v44 = vmul.f32 %v526_v53, %v470_v35  ;;  %v401_v35 = vld [vmem:[%s1275_s1 + $0x38] sm:$0xff] }
 0x3c6   :  { %v514_v47 = vadd.f32 1e-05, %v506_v41  ;;  %v515_v49 = vadd.f32 1e-05, %v507_v54  ;;  %v492_v50 = vmul.f32 %v476_v42, %v476_v42  ;;  %v493_v60 = vmul.f32 %v477_v43, %v477_v43 }
 0x3c7   :  { %550 = vrot.lane.b32.xlu0 %v534_v44, %s934_s9  ;;  %v466_v58 = vpop.xlane.xlu0 %465  ;;  %v469_v59 = vpop.xlane.xlu1 %468 }
 0x3c8   :  { %900 = vrsqrt.f32 %v514_v47  ;;  %v484_v63 = vmul.f32 0.00390625, %v466_v58  ;;  %v485_v51 = vmul.f32 0.00390625, %v469_v59 }
 0x3c9   :  { %902 = vrsqrt.f32 %v515_v49 }
 0x3ca   :  { %v897_v4 = vpop.eup %896  ;;  %v500_v6 = vsub.f32 %v484_v63, %v492_v50  ;;  %v501_v7 = vsub.f32 %v485_v51, %v493_v60 }
 0x3cb   :  { %v899_v8 = vpop.eup %898  ;;  %v528_v9 = vmul.f32 %v897_v4, %v400_v3  ;;  %v725_v4 = vld [vmem:[%s1275_s1 + $0x78] sm:$0xff] }
 0x3cc   :  { %v508_v10 = vmax.f32 %v500_v6, 0.0  ;;  %v509_v13 = vmax.f32 %v501_v7, 0.0  ;;  %v529_v15 = vmul.f32 %v899_v8, %v401_v35 }
 0x3cd   :  { %v536_v19 = vmul.f32 %v528_v9, %v1155_v56 }
 0x3ce   :  { %v516_v20 = vadd.f32 1e-05, %v508_v10  ;;  %v517_v22 = vadd.f32 1e-05, %v509_v13  ;;  %v537_v25 = vmul.f32 %v529_v15, %v1157_v57 }
 0x3cf   :  { %554 = vrot.lane.b32.xlu1 %v536_v19, %s934_s9 }
 0x3d0   :  { %904 = vrsqrt.f32 %v516_v20  ;;  %556 = vrot.lane.b32.xlu0 %v537_v25, %s934_s9 }
 0x3d1   :  { %906 = vrsqrt.f32 %v517_v22 }
 0x3d2   :  { %v901_v30 = vpop.eup %900 }
 0x3d3   :  { %v903_v56 = vpop.eup %902  ;;  %v530_v31 = vmul.f32 %v901_v30, %v402_v28 }
 0x3d4   :  { %v531_v32 = vmul.f32 %v903_v56, %v403_v26 }
 0x3d5   :  { %v538_v57 = vmul.f32 %v530_v31, %v1163_v16 }
 0x3d6   :  { %v539_v37 = vmul.f32 %v531_v32, %v1165_v18 }
 0x3d7   :  { %558 = vrot.lane.b32.xlu1 %v538_v57, %s934_s9 }
 0x3d8   :  { %560 = vrot.lane.b32.xlu0 %v539_v37, %s934_s9 }
 0x3da   :  { %v905_v52 = vpop.eup %904 }
 0x3db   :  { %v907_v39 = vpop.eup %906  ;;  %v532_v40 = vmul.f32 %v905_v52, %v404_v34 }
 0x3dc   :  { %v533_v41 = vmul.f32 %v907_v39, %v405_v38 }
 0x3dd   :  { %v540_v54 = vmul.f32 %v532_v40, %v476_v42 }
 0x3de   :  { %v541_v16 = vmul.f32 %v533_v41, %v477_v43 }
 0x3df   :  { %562 = vrot.lane.b32.xlu1 %v540_v54, %s934_s9 }
 0x3e0   :  { %564 = vrot.lane.b32.xlu0 %v541_v16, %s934_s9 }
 0x3e3   :  { %584 = vperm.xlu1 %868, %v526_v53  }
 0x3e4   :  { %589 = vperm.xlu0 %869, %v1182_v33  }
 0x3e7   :  { %599 = vperm.xlu1 %868, %v529_v15  }
 0x3e8   :  { %594 = vperm.xlu0 %869, %v528_v9  }
 0x3eb   :  { %604 = vperm.xlu1 %868, %v530_v31  }
 0x3ec   :  { %609 = vperm.xlu0 %869, %v531_v32  }
 0x3ef   :  { %870 = vset.pattern.permute.xlu1 %v932_v1 }
 0x3f0   :  { %871 = vset.pattern.permute.xlu0 %v932_v1 }
 0x437   :  { %v553_v42 = vpop.permute.xlu1 %552 }
 0x438   :  { %v575_v43 = vsub.f32 %v1170_v21, %v553_v42 }
 0x439   :  { %v551_v18 = vpop.permute.xlu0 %550 }
 0x43a   :  { %v574_v44 = vsub.f32 %v1179_v36, %v551_v18 }
 0x43c   :  { %640 = vperm.xlu1 %870, %v574_v44  }
 0x440   :  { %645 = vperm.xlu1 %870, %v575_v43  }
 0x441   :  { %v555_v47 = vpop.permute.xlu1 %554 }
 0x442   :  { %v576_v53 = vsub.f32 %v400_v3, %v555_v47  ;;  %v557_v33 = vpop.permute.xlu0 %556  ;;  %v722_v3 = vld [vmem:[%s1275_s1 + $0x60] sm:$0xff] }
 0x443   :  { %v577_v49 = vsub.f32 %v401_v35, %v557_v33  ;;  %v724_v35 = vld [vmem:[%s1275_s1 + $0x70] sm:$0xff] }
 0x444   :  { %873 = vset.pattern.permute.xlu1 %v933_v2  ;;  %650 = vperm.xlu0 %871, %v576_v53  }
 0x445   :  { %619 = vperm.xlu1 %873, %v533_v41  }
 0x448   :  { %872 = vset.pattern.permute.xlu0 %v933_v2 }
 0x449   :  { %874 = vset.pattern.permute.xlu1 %v932_v1  ;;  %614 = vperm.xlu0 %872, %v532_v40   ;;  %v559_v50 = vpop.permute.xlu1 %558 }
 0x44a   :  { %655 = vperm.xlu1 %874, %v577_v49   ;;  %v578_v36 = vsub.f32 %v402_v28, %v559_v50  ;;  %v561_v58 = vpop.permute.xlu0 %560 }
 0x44b   :  { %v579_v21 = vsub.f32 %v403_v26, %v561_v58 }
 0x44d   :  { %875 = vset.pattern.permute.xlu0 %v932_v1  ;;  %v723_v1 = vld [vmem:[%s1275_s1 + $0x68] sm:$0xff] }
 0x44e   :  { %660 = vperm.xlu1 %874, %v578_v36  }
 0x451   :  { %v563_v59 = vpop.permute.xlu1 %562 }
 0x452   :  { %v565_v60 = vpop.permute.xlu0 %564  ;;  %v580_v63 = vsub.f32 %v404_v34, %v563_v59  ;;  %665 = vperm.xlu1 %874, %v579_v21  }
 0x453   :  { %v581_v51 = vsub.f32 %v405_v38, %v565_v60 }
 0x454   :  { %670 = vperm.xlu0 %875, %v580_v63  }
 0x456   :  { %675 = vperm.xlu1 %874, %v581_v51  }
 0x458   :  { %877 = vset.pattern.permute.xlu0 %v933_v2 }
 0x459   :  { %733 = vperm.xlu0 %877, %v723_v1  }
 0x45a   :  { %876 = vset.pattern.permute.xlu1 %v933_v2 }
 0x45b   :  { %728 = vperm.xlu1 %876, %v722_v3  }
 0x45f   :  { %738 = vperm.xlu1 %876, %v724_v35  }
 0x462   :  { %v585_v6 = vpop.permute.xlu1 %584 }
 0x463   :  { %743 = vperm.xlu1 %876, %v725_v4   ;;  %v590_v8 = vpop.permute.xlu0 %589  ;;  %v622_v15 = vmul.f32 %v585_v6, %v1075_v45  ;;  %v623_v19 = vmul.f32 %v585_v6, %v1077_v46 }
 0x464   :  { %v624_v20 = vmul.f32 %v590_v8, %v1081_v48  ;;  %v625_v22 = vmul.f32 %v590_v8, %v1087_v55 }
 0x466   :  { %v600_v7 = vpop.permute.xlu1 %599 }
 0x467   :  { %v595_v10 = vpop.permute.xlu0 %594  ;;  %v628_v55 = vmul.f32 %v600_v7, %v1101_v0  ;;  %v629_v40 = vmul.f32 %v600_v7, %v1107_v5 }
 0x468   :  { %v626_v46 = vmul.f32 %v595_v10, %v1095_v61  ;;  %v627_v48 = vmul.f32 %v595_v10, %v1097_v62 }
 0x46a   :  { %v605_v9 = vpop.permute.xlu1 %604 }
 0x46b   :  { %v610_v31 = vpop.permute.xlu0 %609  ;;  %v630_v62 = vmul.f32 %v605_v9, %v1115_v11  ;;  %v631_v50 = vmul.f32 %v605_v9, %v1117_v12 }
 0x46c   :  { %v632_v0 = vmul.f32 %v610_v31, %v1121_v14  ;;  %v633_v5 = vmul.f32 %v610_v31, %v1127_v17 }
 0x4bb   :  { %v641_v13 = vpop.permute.xlu1 %640 }
 0x4bc   :  { %v678_v25 = vadd.f32 %v641_v13, %v622_v15  ;;  %v679_v28 = vadd.f32 %v641_v13, %v623_v19 }
 0x4be   :  { %v694_v32 = vmax.f32 %v678_v25, 0.0  ;;  %v695_v37 = vmax.f32 %v679_v28, 0.0  ;;  %v883_v25 = vld [vmem:[%s1278_s4 + $0x8] sm:$0xff]  }
 0x4bf   :  { %v646_v26 = vpop.permute.xlu1 %645 }
 0x4c0   :  { %v680_v30 = vadd.f32 %v646_v26, %v624_v20  ;;  %v681_v56 = vadd.f32 %v646_v26, %v625_v22  ;;  %v882_v22 = vld [vmem:[%s1278_s4] sm:$0xff]   ;;  %s908_s4 = scalar_lea.vmem %s831_s3, 1024 }
 0x4c1   :  { %p909_p0 = scmp.ne.s32.totalorder %s831_s3, %s908_s4  ;;  %p914_p2 = scmp.lt.s32.totalorder %s908_s4, %s908_s4 }
 0x4c2   :  { %v696_v57 = vmax.f32 %v680_v30, 0.0  ;;  %v697_v34 = vmax.f32 %v681_v56, 0.0 }
 0x4c3   :  { %v651_v45 = vpop.permute.xlu0 %650  ;;  %p915_p3 = por %p914_p2, %p913_p1 }
 0x4c4   :  { %v620_v38 = vpop.permute.xlu1 %619  ;;  %v711_v52 = vpack.c.bf16 %v697_v34, %v695_v37  ;;  %v710_v39 = vpack.c.bf16 %v696_v57, %v694_v32  ;;  %v682_v41 = vadd.f32 %v651_v45, %v626_v46  ;;  %v683_v54 = vadd.f32 %v651_v45, %v627_v48 }
 0x4c5   :  { %v636_v11 = vmul.f32 %v620_v38, %v1141_v27  ;;  %v637_v12 = vmul.f32 %v620_v38, %v1147_v29  ;;  %p916_p4 = pnand %p915_p3, %p909_p0 }
 0x4c6   :  { %763 = vmatprep.subr.bf16.mxu1 %v711_v52  ;;  %v698_v42 = vmax.f32 %v682_v41, 0.0  ;;  %v699_v43 = vmax.f32 %v683_v54, 0.0 }
 0x4c7   :  { %764 = vmatpush1.bf16.msra.mxu1 %v710_v39 }
 0x4c8   :  { %v615_v36 = vpop.permute.xlu0 %614 }
 0x4c9   :  { %v656_v16 = vpop.permute.xlu1 %655  ;;  %v634_v60 = vmul.f32 %v615_v36, %v1135_v23  ;;  %v635_v63 = vmul.f32 %v615_v36, %v1137_v24 }
 0x4ca   :  { %v684_v18 = vadd.f32 %v656_v16, %v628_v55  ;;  %v685_v44 = vadd.f32 %v656_v16, %v629_v40 }
 0x4cc   :  { %v700_v47 = vmax.f32 %v684_v18, 0.0  ;;  %v701_v53 = vmax.f32 %v685_v44, 0.0 }
 0x4cd   :  { %v661_v33 = vpop.permute.xlu1 %660 }
 0x4ce   :  { %v713_v49 = vpack.c.bf16 %v701_v53, %v699_v43  ;;  %v712_v61 = vpack.c.bf16 %v700_v47, %v698_v42  ;;  %v686_v58 = vadd.f32 %v661_v33, %v630_v62  ;;  %v687_v21 = vadd.f32 %v661_v33, %v631_v50 }
 0x4d0   :  { %765 = vmatprep.subr.bf16.mxu1 %v713_v49  ;;  %v702_v6 = vmax.f32 %v686_v58, 0.0  ;;  %v703_v7 = vmax.f32 %v687_v21, 0.0 }
 0x4d1   :  { %766 = vmatpush1.bf16.msra.mxu1 %v712_v61  ;;  %v666_v59 = vpop.permute.xlu1 %665 }
 0x4d2   :  { %v688_v51 = vadd.f32 %v666_v59, %v632_v0  ;;  %v689_v3 = vadd.f32 %v666_v59, %v633_v5 }
 0x4d3   :  { %v671_v1 = vpop.permute.xlu0 %670 }
 0x4d4   :  { %v704_v35 = vmax.f32 %v688_v51, 0.0  ;;  %v705_v14 = vmax.f32 %v689_v3, 0.0  ;;  %v690_v4 = vadd.f32 %v671_v1, %v634_v60  ;;  %v691_v17 = vadd.f32 %v671_v1, %v635_v63 }
 0x4d5   :  { %v676_v8 = vpop.permute.xlu1 %675 }
 0x4d6   :  { %v692_v9 = vadd.f32 %v676_v8, %v636_v11  ;;  %v693_v10 = vadd.f32 %v676_v8, %v637_v12  ;;  %v715_v13 = vpack.c.bf16 %v705_v14, %v703_v7  ;;  %v714_v23 = vpack.c.bf16 %v704_v35, %v702_v6 }
 0x4d7   :  { %v706_v15 = vmax.f32 %v690_v4, 0.0  ;;  %v707_v24 = vmax.f32 %v691_v17, 0.0 }
 0x4d8   :  { %v708_v19 = vmax.f32 %v692_v9, 0.0  ;;  %v709_v20 = vmax.f32 %v693_v10, 0.0  ;;  %767 = vmatprep.subr.bf16.mxu1 %v715_v13  ;;  %v734_v30 = vpop.permute.xlu0 %733 }
 0x4d9   :  { %768 = vmatpush1.bf16.msra.mxu1 %v714_v23 }
 0x4da   :  { %v717_v27 = vpack.c.bf16 %v709_v20, %v707_v24  ;;  %v716_v29 = vpack.c.bf16 %v708_v19, %v706_v15  ;;  %v729_v28 = vpop.permute.xlu1 %728 }
 0x4dc   :  { %769 = vmatprep.subr.bf16.mxu1 %v717_v27 }
 0x4dd   :  { %770 = vmatpush1.bf16.msra.mxu1 %v716_v29 }
 0x4de   :  { %v739_v38 = vpop.permute.xlu1 %738 }
 0x4e0   :  { %851 = vmatmul.mubr.msk.bf16.vlgmr.msra.gmra.mrb[0].mxu1 %vm756_vm1, %v882_v22 }
 0x4e1   :  { %805 = vmatprep.mubr.bf16.mxu1 %v933_v2 }
 0x4e2   :  { %v744_v46 = vpop.permute.xlu1 %743 }
 0x4e8   :  { %852 = vmatmul.mubr.msk.bf16.gmra.mrb[4].mxu1 %vm756_vm1, %v883_v25 }
 0x5b3   :  { %v797_v26 = vpop.f32.mrb[0].mxu1 }
 0x5b4   :  { %v798_v56 = vadd.f32 %v797_v26, %v729_v28  ;;  %v799_v31 = vpop.f32.mrb[1].mxu1 }
 0x5b5   :  { %v800_v32 = vadd.f32 %v799_v31, %v729_v28  ;;  %v801_v57 = vpop.f32.mrb[2].mxu1 }
 0x5b6   :  { %816 = vst [vmem:[#allocation2] sm:$0xff] %v798_v56  ;;  %v802_v37 = vadd.f32 %v801_v57, %v734_v30  ;;  %v803_v34 = vpop.f32.mrb[3].mxu1 }
 0x5b7   :  { %821 = vst [vmem:[#allocation2 + $0x20] sm:$0xff] %v800_v32  ;;  %v804_v52 = vadd.f32 %v803_v34, %v734_v30 }
 0x5b8   :  { %817 = vst [vmem:[#allocation2 + $0x8] sm:$0xff] %v802_v37 }
 0x5b9   :  { %822 = vst [vmem:[#allocation2 + $0x28] sm:$0xff] %v804_v52 }
 0x5bb   :  { %v807_v2 = vpop.f32.mrb[4].mxu1 }
 0x5bc   :  { %v808_v39 = vadd.f32 %v807_v2, %v739_v38  ;;  %v809_v45 = vpop.f32.mrb[5].mxu1 }
 0x5bd   :  { %v810_v48 = vadd.f32 %v809_v45, %v739_v38  ;;  %v811_v55 = vpop.f32.mrb[6].mxu1 }
 0x5be   :  { %818 = vst [vmem:[#allocation2 + $0x10] sm:$0xff] %v808_v39  ;;  %v812_v40 = vadd.f32 %v811_v55, %v744_v46  ;;  %v813_v41 = vpop.f32.mrb[7].mxu1 }
 0x5bf   :  { %823 = vst [vmem:[#allocation2 + $0x30] sm:$0xff] %v810_v48  ;;  %v814_v54 = vadd.f32 %v813_v41, %v744_v46 }
 0x5c0   :  { %819 = vst [vmem:[#allocation2 + $0x18] sm:$0xff] %v812_v40 }
 0x5c1   :  { %824 = vst [vmem:[#allocation2 + $0x38] sm:$0xff] %v814_v54 }
 0x5c2   :  { %919 = shalt.err (!%p916_p4)
}
 0x5c3   :  { %s920_s20 = scalar_lea.hbm %s1279_s5, 1024 }
 0x5c4   :  { %p921_p5 = scmp.ne.s32.totalorder %s1279_s5, %s920_s20  ;;  %p924_p6 = scmp.lt.u32.totalorder %s920_s20, %s1279_s5 }
 0x5c6   :  { %p926_p7 = pnand %p924_p6, %p921_p5 }
 0x5c8   :  { %929 = shalt.err (!%p926_p7)
}
 0x5c9   :  { %s936_s25 = smov 128   ;;  %s937_s2 = smov 8  }
 0x5ca   :  { %836 = dma.vmem_to_hbm [thread:$0]  %s831_s3, 1024, %s1279_s5, [#allocation3], %s936_s25, %s936_s25, %s937_s2  }
 0x5cb   :  { %930 = dma.done.wait [#allocation3], 1024  }
 0x5cc   :  { %931 = vsyncadd [#allocation3], 4294966272 }
 0x5cd   :  { %840 = vsyncpa [#allocation3], 1 }

</bundles_post_ra>
